<compile_context>
chip_gen: v5e
topology: v5e:2x2
jax: 0.10.0
libtpu: 0.0.40
codegen_flags: <defaults>
</compile_context>

<pallas_src>
import functools

import jax
import jax.numpy as jnp
from jax.experimental import pallas as pl
from jax.experimental.pallas import tpu as pltpu


def _attn_kernel(xchw_ref, xwin_ref, w_ref, o_ref, *, dqk, dv, hwk, nwin):
    """Fused BigGAN self-attention for one batch element (channel-major).

    xchw_ref : (1, C, HW)  f32  natural NCHW flatten; queries (folded), residual, output.
    xwin_ref : (1, C, HW)  bf16 channel-major with lanes grouped by pooling-window
                           offset: lane s*hwk + p is offset s of window p, so
                           MaxPool2d(P,P) == elementwise max over nwin lane blocks.
    w_ref    : (2*dqk+2*dv, C) bf16 packed weights: [Wq^T ; Wk^T ; Wv^T ; (gating*Wo)^T].
    """
    x = xchw_ref[0]                                                     # (C, HW) f32
    xw = xwin_ref[0]                                                    # (C, HW) bf16
    w = w_ref[...]                                                      # (40, C) bf16

    # --- fused K/V 1x1 conv, channel-major: one bf16 MXU matmul, HW on lanes.
    kv_t = jnp.dot(w[dqk:2 * dqk + dv], xw,
                   preferred_element_type=jnp.float32)                  # (dqk+dv, HW)

    # --- MaxPool2d(P,P) on K/V: VPU max over the nwin window-offset lane blocks.
    pooled = kv_t[:, 0:hwk]
    for s in range(1, nwin):
        pooled = jnp.maximum(pooled, kv_t[:, s * hwk:(s + 1) * hwk])    # (dqk+dv, hwk)
    kp_t = pooled[0:dqk, :]                                             # (dqk, hwk) = Kp^T
    vp_t = pooled[dqk:, :]                                              # (dv,  hwk) = Vp^T

    # --- scores^T = (Kp @ Wq^T) @ x : the big matmul has K=C and N=HW lanes.
    wq_t = w[0:dqk].astype(jnp.float32)                                 # (dqk, C)
    a = jax.lax.dot_general(kp_t, wq_t, (((0,), (0,)), ((), ())),
                            preferred_element_type=jnp.float32)         # (hwk, C) = Kp @ Wq^T
    scores_t = jnp.dot(a, x, preferred_element_type=jnp.float32)        # (hwk, HW)

    # --- softmax over the key axis (axis 0 = sublanes: mostly VPU, no 64-lane XLU reduce).
    m = jnp.max(scores_t, axis=0, keepdims=True)                        # (1, HW)
    e = jnp.exp(scores_t - m)
    denom = jnp.sum(e, axis=0, keepdims=True)
    probs_t = e * pl.reciprocal(denom, approx=True)                     # (hwk, HW)

    # --- out^T = (gating*Wo) @ (Vp^T @ probs^T): both matmuls keep HW on lanes.
    av_t = jnp.dot(vp_t, probs_t, preferred_element_type=jnp.float32)   # (dv, HW)
    gwo_t = w[2 * dqk + dv:].astype(jnp.float32)                        # (dv, C) = (g*Wo)^T
    out_t = jax.lax.dot_general(gwo_t, av_t, (((0,), (0,)), ((), ())),
                                preferred_element_type=jnp.float32)     # (C, HW)

    # --- gated residual, lane-dense channel-major store.
    o_ref[0] = x + out_t


def big_gan_self_attention(hidden, params, *, key_value_pooling=2):
    """hidden: (B, C, H, W) NCHW, like the PyTorch module.  Returns NCHW."""
    B, C, H, W = hidden.shape
    P = key_value_pooling
    assert H % P == 0 and W % P == 0
    HW = H * W
    H2, W2 = H // P, W // P
    hwk = H2 * W2
    nwin = P * P
    dqk = params['wq'].shape[1]
    dv = params['wv'].shape[1]

    # Channel-major view of x: a FREE reshape of NCHW (no transpose), kept in f32
    # because it carries the residual and the output layout.
    x_chw = hidden.astype(jnp.float32).reshape(B, C, HW)

    # Window-grouped channel-major view: the ONLY wrapper transpose over x, in bf16.
    # lane index s*hwk + (h2*W2 + w2)  <->  pixel (P*h2 + s//P, P*w2 + s%P).
    x_win = (hidden.astype(jnp.bfloat16)
             .reshape(B, C, H2, P, W2, P)
             .transpose(0, 1, 3, 5, 2, 4)
             .reshape(B, C, HW))

    # One packed weight input: [Wq^T ; Wk^T ; Wv^T ; (gating*Wo)^T], bf16.
    gwo_t = (params['gating'] * params['wo']).T                         # (dv, C)
    w_pack = jnp.concatenate(
        [params['wq'].T, params['wk'].T, params['wv'].T, gwo_t], axis=0
    ).astype(jnp.bfloat16)                                              # (2*dqk+2*dv, C)

    out = pl.pallas_call(
        functools.partial(_attn_kernel, dqk=dqk, dv=dv, hwk=hwk, nwin=nwin),
        out_shape=jax.ShapeDtypeStruct((B, C, HW), jnp.float32),
        grid=(B,),
        in_specs=[
            pl.BlockSpec((1, C, HW), lambda b: (b, 0, 0)),
            pl.BlockSpec((1, C, HW), lambda b: (b, 0, 0)),
            pl.BlockSpec((2 * dqk + 2 * dv, C), lambda b: (0, 0)),
        ],
        out_specs=pl.BlockSpec((1, C, HW), lambda b: (b, 0, 0)),
        compiler_params=pltpu.CompilerParams(dimension_semantics=("parallel",)),
    )(x_chw, x_win, w_pack)
    return out.reshape(B, C, H, W)


# ----------------------- pure-JAX reference (for checking) -------------------
def _reference(hidden, params, *, key_value_pooling=2):
    B, C, H, W = hidden.shape
    P = key_value_pooling
    x = jnp.transpose(hidden.astype(jnp.float32), (0, 2, 3, 1))   # NHWC
    q = x @ params['wq']
    k = x @ params['wk']
    v = x @ params['wv']

    def pool(t):
        return jnp.max(t.reshape(B, H // P, P, W // P, P, -1), axis=(2, 4))

    qf = q.reshape(B, H * W, -1)
    kf = pool(k).reshape(B, (H // P) * (W // P), -1)
    vf = pool(v).reshape(B, (H // P) * (W // P), -1)
    probs = jax.nn.softmax(jnp.einsum('bqd,bkd->bqk', qf, kf), axis=-1)
    attn = jnp.einsum('bqk,bkd->bqd', probs, vf)
    out = jnp.einsum('bqd,cd->bcq', attn, params['wo']).reshape(B, C, H, W)
    return hidden.astype(jnp.float32) + params['gating'] * out


# ------------------------------ parameters -----------------------------------
def init_params(key, *, hidden_dim=32, query_key_dim=4, value_dim=16):
    k1, k2, k3, k4 = jax.random.split(key, 4)
    s = 0.05
    return dict(
        wq=jax.random.normal(k1, (hidden_dim, query_key_dim), jnp.float32) * s,
        wk=jax.random.normal(k2, (hidden_dim, query_key_dim), jnp.float32) * s,
        wv=jax.random.normal(k3, (hidden_dim, value_dim), jnp.float32) * s,
        wo=jax.random.normal(k4, (hidden_dim, value_dim), jnp.float32) * s,   # (C_out, dv)
        # TODO(synk): PyTorch initializes gating to 0 (attention no-op); use a
        # nonzero deterministic value so the attention path is exercised.
        gating=jnp.float32(0.1),
    )


# --------------------------------- main ---------------------------------------
if __name__ == "__main__":
    # hidden_dim=32, query_key_dim=4, value_dim=16, key_value_pooling=2
    B, C, H, W = 2, 32, 16, 16
    key = jax.random.PRNGKey(0)
    k_x, k_p = jax.random.split(key)
    hidden = jax.random.normal(k_x, (B, C, H, W), jnp.float32)   # NCHW like PyTorch
    params = init_params(k_p)

    fwd = jax.jit(big_gan_self_attention)
    out = fwd(hidden, params)
    jax.block_until_ready(out)

    ref = _reference(hidden, params)
    assert out.shape == (B, C, H, W)
    assert bool(jnp.all(jnp.isfinite(out)))
    # Tolerance slightly loosened vs f32-only: x_win / weights travel as bf16.
    assert bool(jnp.allclose(out, ref, atol=3e-3, rtol=3e-3))
    print("KERNEL_OK")
</pallas_src>

<mosaic_0001>
module attributes {stable_mosaic.version = 11 : i64} {
  func.func @_attn_kernel(%arg0: i32, %arg1: memref<1x32x256xf32, #tpu.memory_space<vmem>>, %arg2: memref<1x32x256xbf16, #tpu.memory_space<vmem>>, %arg3: memref<40x32xbf16, #tpu.memory_space<vmem>>, %arg4: memref<1x32x256xf32, #tpu.memory_space<vmem>>) attributes {dimension_semantics = [#tpu.dimension_semantics<parallel>], iteration_bounds = array<i64: 2>, scalar_prefetch = 0 : i64, scratch_operands = 0 : i64, tpu.core_type = #tpu.core_type<tc>, window_params = [{transform_indices = @transform_0, window_bounds = array<i64: 1, 32, 256>}, {transform_indices = @transform_1, window_bounds = array<i64: 1, 32, 256>}, {pipeline_mode = #tpu.pipeline_mode<synchronous>, transform_indices = @transform_2, window_bounds = array<i64: 40, 32>}, {transform_indices = @transform_3, window_bounds = array<i64: 1, 32, 256>}]} {
    %c0 = arith.constant 0 : index
    %c0_0 = arith.constant 0 : index
    %c0_1 = arith.constant 0 : index
    %0 = vector.load %arg1[%c0, %c0_0, %c0_1] : memref<1x32x256xf32, #tpu.memory_space<vmem>>, vector<1x32x256xf32>
    %1 = vector.shape_cast %0 : vector<1x32x256xf32> to vector<32x256xf32>
    %c0_2 = arith.constant 0 : index
    %c0_3 = arith.constant 0 : index
    %c0_4 = arith.constant 0 : index
    %2 = vector.load %arg2[%c0_2, %c0_3, %c0_4] : memref<1x32x256xbf16, #tpu.memory_space<vmem>>, vector<1x32x256xbf16>
    %3 = vector.shape_cast %2 : vector<1x32x256xbf16> to vector<32x256xbf16>
    %c0_5 = arith.constant 0 : index
    %c0_6 = arith.constant 0 : index
    %4 = vector.load %arg3[%c0_5, %c0_6] : memref<40x32xbf16, #tpu.memory_space<vmem>>, vector<40x32xbf16>
    %5 = vector.extract_strided_slice %4 {offsets = [4, 0], sizes = [20, 32], strides = [1, 1]} : vector<40x32xbf16> to vector<20x32xbf16>
    %cst = arith.constant dense<0.000000e+00> : vector<20x256xf32>
    %6 = tpu.matmul %5, %3, %cst {dimension_numbers = #tpu.dot_dimension_numbers<[1], [0], [0], [1], [0, 0, 1, 1], [], []>} : vector<20x32xbf16>, vector<32x256xbf16>, vector<20x256xf32> -> vector<20x256xf32>
    %7 = vector.extract_strided_slice %6 {offsets = [0, 0], sizes = [20, 64], strides = [1, 1]} : vector<20x256xf32> to vector<20x64xf32>
    %8 = vector.extract_strided_slice %6 {offsets = [0, 64], sizes = [20, 64], strides = [1, 1]} : vector<20x256xf32> to vector<20x64xf32>
    %9 = arith.maximumf %7, %8 : vector<20x64xf32>
    %10 = vector.extract_strided_slice %6 {offsets = [0, 128], sizes = [20, 64], strides = [1, 1]} : vector<20x256xf32> to vector<20x64xf32>
    %11 = arith.maximumf %9, %10 : vector<20x64xf32>
    %12 = vector.extract_strided_slice %6 {offsets = [0, 192], sizes = [20, 64], strides = [1, 1]} : vector<20x256xf32> to vector<20x64xf32>
    %13 = arith.maximumf %11, %12 : vector<20x64xf32>
    %14 = vector.extract_strided_slice %13 {offsets = [0, 0], sizes = [4, 64], strides = [1, 1]} : vector<20x64xf32> to vector<4x64xf32>
    %15 = vector.extract_strided_slice %13 {offsets = [4, 0], sizes = [16, 64], strides = [1, 1]} : vector<20x64xf32> to vector<16x64xf32>
    %16 = vector.extract_strided_slice %4 {offsets = [0, 0], sizes = [4, 32], strides = [1, 1]} : vector<40x32xbf16> to vector<4x32xbf16>
    %17 = arith.extf %16 : vector<4x32xbf16> to vector<4x32xf32>
    %cst_7 = arith.constant dense<0.000000e+00> : vector<64x32xf32>
    %18 = tpu.matmul %14, %17, %cst_7 {dimension_numbers = #tpu.dot_dimension_numbers<[0], [0], [1], [1], [0, 1, 1, 1], [], []>} : vector<4x64xf32>, vector<4x32xf32>, vector<64x32xf32> -> vector<64x32xf32>
    %cst_8 = arith.constant dense<0.000000e+00> : vector<64x256xf32>
    %19 = tpu.matmul %18, %1, %cst_8 {dimension_numbers = #tpu.dot_dimension_numbers<[1], [0], [0], [1], [0, 0, 1, 1], [], []>} : vector<64x32xf32>, vector<32x256xf32>, vector<64x256xf32> -> vector<64x256xf32>
    %cst_9 = arith.constant dense<0xFF800000> : vector<256xf32>
    %20 = vector.multi_reduction <maximumf>, %19, %cst_9 [0] : vector<64x256xf32> to vector<256xf32>
    %21 = vector.shape_cast %20 : vector<256xf32> to vector<1x256xf32>
    %22 = vector.broadcast %21 : vector<1x256xf32> to vector<64x256xf32>
    %23 = arith.subf %19, %22 : vector<64x256xf32>
    %24 = math.exp %23 : vector<64x256xf32>
    %cst_10 = arith.constant dense<0.000000e+00> : vector<256xf32>
    %25 = vector.multi_reduction <add>, %24, %cst_10 [0] : vector<64x256xf32> to vector<256xf32>
    %26 = vector.shape_cast %25 : vector<256xf32> to vector<1x256xf32>
    %27 = tpu.reciprocal %26 {approx = true} : vector<1x256xf32> -> vector<1x256xf32>
    %28 = vector.broadcast %27 : vector<1x256xf32> to vector<64x256xf32>
    %29 = arith.mulf %24, %28 : vector<64x256xf32>
    %cst_11 = arith.constant dense<0.000000e+00> : vector<16x256xf32>
    %30 = tpu.matmul %15, %29, %cst_11 {dimension_numbers = #tpu.dot_dimension_numbers<[1], [0], [0], [1], [0, 0, 1, 1], [], []>} : vector<16x64xf32>, vector<64x256xf32>, vector<16x256xf32> -> vector<16x256xf32>
    %31 = vector.extract_strided_slice %4 {offsets = [24, 0], sizes = [16, 32], strides = [1, 1]} : vector<40x32xbf16> to vector<16x32xbf16>
    %32 = arith.extf %31 : vector<16x32xbf16> to vector<16x32xf32>
    %cst_12 = arith.constant dense<0.000000e+00> : vector<32x256xf32>
    %33 = tpu.matmul %32, %30, %cst_12 {dimension_numbers = #tpu.dot_dimension_numbers<[0], [0], [1], [1], [0, 1, 1, 1], [], []>} : vector<16x32xf32>, vector<16x256xf32>, vector<32x256xf32> -> vector<32x256xf32>
    %34 = arith.addf %1, %33 : vector<32x256xf32>
    %c0_13 = arith.constant 0 : index
    %c0_14 = arith.constant 0 : index
    %c0_15 = arith.constant 0 : index
    %35 = vector.load %arg4[%c0_13, %c0_14, %c0_15] : memref<1x32x256xf32, #tpu.memory_space<vmem>>, vector<1x32x256xf32>
    %36 = vector.shape_cast %35 : vector<1x32x256xf32> to vector<32x256xf32>
    %37 = vector.shape_cast %34 : vector<32x256xf32> to vector<1x32x256xf32>
    tpu.vector_store %arg4[%c0_13, %c0_14, %c0_15], %37 {strides = array<i32>} : memref<1x32x256xf32, #tpu.memory_space<vmem>>, vector<1x32x256xf32>,
    return
  }
  func.func @transform_0(%arg0: i32) -> (i32, i32, i32) {
    %c0_i32 = arith.constant 0 : i32
    %c0_i32_0 = arith.constant 0 : i32
    %c0_i32_1 = arith.constant 0 : i32
    return %arg0, %c0_i32, %c0_i32_0 : i32, i32, i32
  }
  func.func @transform_1(%arg0: i32) -> (i32, i32, i32) {
    %c0_i32 = arith.constant 0 : i32
    %c0_i32_0 = arith.constant 0 : i32
    %c0_i32_1 = arith.constant 0 : i32
    return %arg0, %c0_i32, %c0_i32_0 : i32, i32, i32
  }
  func.func @transform_2(%arg0: i32) -> (i32, i32) {
    %c0_i32 = arith.constant 0 : i32
    %c0_i32_0 = arith.constant 0 : i32
    %c0_i32_1 = arith.constant 0 : i32
    return %c0_i32, %c0_i32_0 : i32, i32
  }
  func.func @transform_3(%arg0: i32) -> (i32, i32, i32) {
    %c0_i32 = arith.constant 0 : i32
    %c0_i32_0 = arith.constant 0 : i32
    %c0_i32_1 = arith.constant 0 : i32
    return %arg0, %c0_i32, %c0_i32_0 : i32, i32, i32
  }
}

</mosaic_0001>

<bundles_post_ra>
// kernel: big_gan_self_attention.1
= control target key start
LH: loop header
LB: loop body
LE: loop exit
PB: predicated region body
PF: predicated region fallthrough
CT: control target
= control target key end

     0   :  { %s1058_s12 = smov 0   ;;  %s1261_s0 = inlined_call_operand.vmem [shape: f32[2,32,256], index: 0, kind: input, shape index: {}]   ;;  %s1262_s1 = inlined_call_operand.vmem [shape: bf16[2,32,256], index: 1, kind: input, shape index: {}]   ;;  %s1263_s2 = inlined_call_operand.vmem [shape: bf16[40,32], index: 2, kind: input, shape index: {}]   ;;  %s1264_s3 = inlined_call_operand.vmem [shape: f32[2,32,256], index: 3, kind: output, shape index: {}]  }
   0x1 LB: > { %s891_s13 = sadd.s32 4294967295, %s1035_s12   ;;  %p895_p0 = scmp.ge.s32.totalorder %s1035_s12, 1  ;;  %s1035_s12 = sphi %s1058_s12, %s13_s12  }
   0x2   : > { %p147_p1 = scmp.lt.s32.totalorder %s1035_s12, 3 }
   0x4   : > { %p148_p2 = pnand %p895_p0, %p147_p1 }
   0x5   : > { %p176_p3 = scmp.lt.s32.totalorder (!%p148_p2), %s891_s13, 1  ;;  %s1037_s22 = smov (!%p148_p2), 64  }
   0x6   : > { %151 = sbr.rel (%p148_p2) target bundleno = 1137 (0x471), region = 32 }
   0xb   : > { %v206_v0 = vld [vmem:[%s1263_s2 + $0x8] sm:$0xf]  ;;  %s1266_s13 = smov (!%p176_p3, %s891_s13), 1  ;;  %v972_v2 = vld [vmem:[%s1263_s2] sm:$0xff]  ;;  %vm217_vm0 = vcmask 1045504   ;;  %vm241_vm1 = vcmask 261120  }
   0xc   : > { %v214_v1 = vunpack.c.l.b16 %v206_v0  ;;  %s966_s16 = sshll.u32 %s1266_s13, 5  ;;  %v218_v15 = vrot.slane %v972_v2, 2  ;;  %v204_v28 = vld [vmem:[%s1263_s2] sm:$0xf]  ;;  %vm375_vm2 = vcmask 1043456   ;;  %vm350_vm3 = vcmask 31744  }
   0xd   : > { %s185_s19 = scalar_lea.vmem %s1262_s1, %s966_s16  ;;  %v317_v29 = vunpack.c.l.bf16 %v204_v28  ;;  %s965_s25 = sshll.u32 %s1266_s13, 6  ;;  %vm652_vm4 = vcmask 523264   ;;  %vm737_vm5 = vcmask 130048  }
   0xe   : > { %v216_v3 = vpack.c.b16 %v214_v1, %v214_v1  ;;  %v916_v4 = vld [vmem:[%s185_s19 + $0x10] sm:$0xf]  ;;  %v971_v5 = vld [vmem:[%s185_s19 + $0x14] sm:$0xf0]  ;;  %v970_v6 = vld [vmem:[%s185_s19 + $0x14] sm:$0xf]  ;;  %s180_s28 = scalar_lea.vmem %s1261_s0, %s965_s25  ;;  %s190_s6 = scalar_lea.vmem %s1264_s3, %s965_s25 }
   0xf   : > { %v917_v7 = vor.u32 %v971_v5, %v916_v4  ;;  %v918_v8 = vld [vmem:[%s185_s19 + $0x18] sm:$0xf0]  ;;  %v908_v9 = vld [vmem:[%s185_s19] sm:$0xf]  ;;  %v969_v10 = vld [vmem:[%s185_s19 + $0x4] sm:$0xf0]  ;;  %926 = vmatpush.msk.msra.mxu2 %vm375_vm2, %v317_v29 }
  0x10   : > { %v921_v11 = vor.u32 %v970_v6, %v918_v8  ;;  %v968_v12 = vld [vmem:[%s185_s19 + $0x4] sm:$0xf]  ;;  %v910_v13 = vld [vmem:[%s185_s19 + $0x8] sm:$0xf0]  ;;  %v909_v14 = vor.u32 %v969_v10, %v908_v9  ;;  %v219_v16 = vrot.slane %v216_v3, 2  ;;  %v1115_v42 = vld [vmem:[%s180_s28 + $0x30] sm:$0xff] }
  0x11   : > { %254 = vmatpush.bf16.msra.mxu0 %v917_v7  ;;  %973 = vmatpush.bf16.msra.mxu3 %v917_v7  ;;  %v913_v17 = vor.u32 %v968_v12, %v910_v13  ;;  %v1117_v43 = vld [vmem:[%s180_s28 + $0x38] sm:$0xff]  ;;  %v1119_v44 = vld [vmem:[%s180_s28 + $0x20] sm:$0xff]  ;;  %v1123_v45 = vld [vmem:[%s180_s28 + $0x28] sm:$0xff] }
  0x12   : > { %272 = vmatpush.bf16.msra.mxu1 %v921_v11  ;;  %v220_v18 = vsel %vm217_vm0, %v218_v15, %v219_v16  ;;  %v1125_v46 = vld [vmem:[%s180_s28 + $0x10] sm:$0xff]  ;;  %v1127_v47 = vld [vmem:[%s180_s28 + $0x18] sm:$0xff]  ;;  %v1133_v48 = vld [vmem:[%s180_s28] sm:$0xff] }
  0x13   : > { %v1135_v49 = vld [vmem:[%s180_s28 + $0x8] sm:$0xff] }
  0x15   : > { %255 = vmatpush.bf16.msra.mxu0 %v909_v14  ;;  %974 = vmatpush.bf16.msra.mxu3 %v909_v14 }
  0x16   : > { %273 = vmatpush.bf16.msra.mxu1 %v913_v17 }
  0x18   : > { %922 = vmatmul.msk.bf16.vlgmr.msra.gmra.mxu0 %vm241_vm1, %v220_v18  ;;  %923 = vmatmul.msk.bf16.vlgmr.msra.gmra.mxu3 %vm241_vm1, %v219_v16 }
  0x19   : > { %924 = vmatmul.msk.bf16.vlgmr.msra.gmra.mxu1 %vm241_vm1, %v220_v18  ;;  %456 = vmatpush.msrb.mxu3 %v1115_v42 }
  0x1a   : > { %497 = vmatpush.msrb.mxu0 %v1117_v43 }
  0x1b   : > { %457 = vmatpush.msrb.mxu3 %v1119_v44 }
  0x1c   : > { %498 = vmatpush.msrb.mxu0 %v1123_v45 }
  0x1d   : > { %458 = vmatpush.msrb.mxu3 %v1125_v46 }
  0x1e   : > { %499 = vmatpush.msrb.mxu0 %v1127_v47 }
  0x1f   : > { %459 = vmatpush.msrb.mxu3 %v1133_v48 }
  0x20   : > { %500 = vmatpush.msrb.mxu0 %v1135_v49 }
  0x29   : > { %925 = vmatmul.msk.bf16.gmra.mxu1 %vm241_vm1, %v219_v16 }
  0x95   : > { %v257_v19 = vpop.f32.mrf.mxu0 }
  0x96   : > { %v275_v20 = vpop.f32.mrf.mxu1  ;;  %287 = vrot.lane.b32.xlu0 %v257_v19, %s1037_s22 }
  0x9b   : > { %v1095_v31 = vpop.f32.mrf.mxu3 }
  0x9d   : > { %v1098_v33 = vpop.f32.mrf.mxu0 }
  0x9e   : > { %v1082_v21 = vpop.f32.mrf.mxu1  ;;  %305 = vrot.lane.b32.xlu0 %v275_v20, %s1037_s22 }
  0x9f   : > { %307 = vrot.lane.b32.xlu2 %v1082_v21, %s1037_s22 }
  0xa3   : > { %v264_v32 = vpop.f32.mrf.mxu3 }
  0xa6   : > { %v1088_v27 = vpop.f32.mrf.mxu1 }
  0xa7   : > { %309 = vrot.lane.b32.xlu0 %v1088_v27, %s1037_s22  ;;  %291 = vrot.lane.b32.xlu2 %v1095_v31, %s1037_s22 }
  0xae   : > { %v282_v30 = vpop.f32.mrf.mxu1 }
 0x108   : > { %v288_v22 = vpop.permute.xlu0 %287 }
 0x109   : > { %v296_v23 = vmax.f32 %v257_v19, %v288_v22 }
 0x10b   : > { %v299_v24 = vmax.f32 %v296_v23, %v275_v20 }
 0x110   : > { %v306_v25 = vpop.permute.xlu0 %305 }
 0x111   : > { %v1085_v26 = vmax.f32 %v299_v24, %v306_v25 }
 0x113   : > { %318 = vxpose.xlu1.b32.start.end [1/1] (short) (narrow) %v1085_v26, 64 }
 0x1a5   : > { %289 = vrot.lane.b32.xlu1 %v1098_v33, %s1037_s22 }
 0x1b7   : > { %v334_v34 = vpop.trf.xlu1 }
 0x1b8   : > { %927 = vmatmul.msk.f32.vlgmr.msra.gmra.mxu2 %vm350_vm3, %v334_v34 }
 0x1bf   : > { %v335_v35 = vpop.trf.xlu1 }
 0x1c0   : > { %928 = vmatmul.msk.f32.gmra.mxu2 %vm350_vm3, %v335_v35 }
 0x1c7   : > { %v336_v36 = vpop.trf.xlu1 }
 0x1c8   : > { %929 = vmatmul.msk.f32.gmra.mxu2 %vm350_vm3, %v336_v36 }
 0x1cf   : > { %v337_v37 = vpop.trf.xlu1 }
 0x1d0   : > { %930 = vmatmul.msk.f32.gmra.mxu2 %vm350_vm3, %v337_v37 }
 0x1d7   : > { %v338_v38 = vpop.trf.xlu1 }
 0x1d8   : > { %931 = vmatmul.msk.f32.gmra.mxu2 %vm350_vm3, %v338_v38 }
 0x1df   : > { %v339_v39 = vpop.trf.xlu1 }
 0x1e0   : > { %932 = vmatmul.msk.f32.gmra.mxu2 %vm350_vm3, %v339_v39 }
 0x1e7   : > { %v340_v40 = vpop.trf.xlu1 }
 0x1e8   : > { %933 = vmatmul.msk.f32.gmra.mxu2 %vm350_vm3, %v340_v40 }
 0x1ef   : > { %v341_v41 = vpop.trf.xlu1 }
 0x1f0   : > { %934 = vmatmul.msk.f32.gmra.mxu2 %vm350_vm3, %v341_v41 }
 0x23b   : > { %v396_v50 = vpop.f32.mrf.mxu2 }
 0x23c   : > { %935 = vmatmul.msk.f32.vlgmr.msrb.gmra.mxu3 %vm241_vm1, %v396_v50  ;;  %943 = vmatmul.msk.f32.vlgmr.msrb.gmra.mxu0 %vm241_vm1, %v396_v50 }
 0x243   : > { %v399_v51 = vpop.f32.mrf.mxu2 }
 0x244   : > { %936 = vmatmul.msk.f32.gmra.mxu3 %vm241_vm1, %v399_v51  ;;  %944 = vmatmul.msk.f32.gmra.mxu0 %vm241_vm1, %v399_v51 }
 0x24b   : > { %v402_v52 = vpop.f32.mrf.mxu2 }
 0x24c   : > { %937 = vmatmul.msk.f32.gmra.mxu3 %vm241_vm1, %v402_v52  ;;  %945 = vmatmul.msk.f32.gmra.mxu0 %vm241_vm1, %v402_v52 }
 0x253   : > { %v405_v53 = vpop.f32.mrf.mxu2 }
 0x254   : > { %938 = vmatmul.msk.f32.gmra.mxu3 %vm241_vm1, %v405_v53  ;;  %946 = vmatmul.msk.f32.gmra.mxu0 %vm241_vm1, %v405_v53 }
 0x25b   : > { %v408_v54 = vpop.f32.mrf.mxu2 }
 0x25c   : > { %939 = vmatmul.msk.f32.gmra.mxu3 %vm241_vm1, %v408_v54  ;;  %947 = vmatmul.msk.f32.gmra.mxu0 %vm241_vm1, %v408_v54 }
 0x263   : > { %v411_v55 = vpop.f32.mrf.mxu2 }
 0x264   : > { %940 = vmatmul.msk.f32.gmra.mxu3 %vm241_vm1, %v411_v55  ;;  %948 = vmatmul.msk.f32.gmra.mxu0 %vm241_vm1, %v411_v55 }
 0x26b   : > { %v414_v56 = vpop.f32.mrf.mxu2 }
 0x26c   : > { %941 = vmatmul.msk.f32.gmra.mxu3 %vm241_vm1, %v414_v56  ;;  %949 = vmatmul.msk.f32.gmra.mxu0 %vm241_vm1, %v414_v56 }
 0x273   : > { %v417_v57 = vpop.f32.mrf.mxu2 }
 0x274   : > { %942 = vmatmul.msk.f32.gmra.mxu3 %vm241_vm1, %v417_v57  ;;  %950 = vmatmul.msk.f32.gmra.mxu0 %vm241_vm1, %v417_v57 }
 0x2b9   : > { %v502_v58 = vpop.f32.mrf.mxu0 }
 0x2bf   : > { %v1155_v59 = vpop.f32.mrf.mxu3 }
 0x2c1   : > { %v505_v60 = vpop.f32.mrf.mxu0 }
 0x2c7   : > { %v1157_v61 = vpop.f32.mrf.mxu3 }
 0x2c9   : > { %v508_v62 = vpop.f32.mrf.mxu0 }
 0x2ca   : > { %v539_v7 = vmax.f32 %v502_v58, %v508_v62 }
 0x2cf   : > { %v1159_v63 = vpop.f32.mrf.mxu3 }
 0x2d0   : > { %v526_v15 = vmax.f32 %v1155_v59, %v1159_v63 }
 0x2d1   : > { %v511_v0 = vpop.f32.mrf.mxu0 }
 0x2d2   : > { %v540_v8 = vmax.f32 %v505_v60, %v511_v0 }
 0x2d7   : > { %v1161_v1 = vpop.f32.mrf.mxu3 }
 0x2d8   : > { %v527_v16 = vmax.f32 %v1157_v61, %v1161_v1 }
 0x2d9   : > { %v514_v2 = vpop.f32.mrf.mxu0 }
 0x2da   : > { %v541_v10 = vmax.f32 %v539_v7, %v514_v2 }
 0x2df   : > { %v1163_v3 = vpop.f32.mrf.mxu3 }
 0x2e0   : > { %v528_v18 = vmax.f32 %v526_v15, %v1163_v3 }
 0x2e1   : > { %v517_v4 = vpop.f32.mrf.mxu0 }
 0x2e2   : > { %v542_v11 = vmax.f32 %v540_v8, %v517_v4 }
 0x2e7   : > { %v1165_v5 = vpop.f32.mrf.mxu3 }
 0x2e8   : > { %v529_v19 = vmax.f32 %v527_v16, %v1165_v5 }
 0x2e9   : > { %v520_v6 = vpop.f32.mrf.mxu0 }
 0x2ea   : > { %v543_v13 = vmax.f32 %v541_v10, %v520_v6 }
 0x2ef   : > { %v1167_v9 = vpop.f32.mrf.mxu3 }
 0x2f0   : > { %v530_v23 = vmax.f32 %v528_v18, %v1167_v9 }
 0x2f1   : > { %v523_v12 = vpop.f32.mrf.mxu0 }
 0x2f2   : > { %v544_v14 = vmax.f32 %v542_v11, %v523_v12 }
 0x2f4   : > { %v545_v17 = vmax.f32 %v543_v13, %v544_v14 }
 0x2f6   : > { %v546_v20 = vrot.slane %v545_v17, 4 }
 0x2f7   : > { %v1175_v22 = vpop.f32.mrf.mxu3 }
 0x2f8   : > { %v547_v24 = vmax.f32 %v545_v17, %v546_v20  ;;  %v531_v25 = vmax.f32 %v529_v19, %v1175_v22 }
 0x2fa   : > { %v548_v28 = vrot.slane %v547_v24, 2  ;;  %v532_v29 = vmax.f32 %v530_v23, %v531_v25 }
 0x2fc   : > { %v549_v30 = vmax.f32 %v547_v24, %v548_v28  ;;  %v533_v32 = vrot.slane %v532_v29, 4 }
 0x2fe   : > { %v550_v34 = vrot.slane %v549_v30, 1  ;;  %v534_v35 = vmax.f32 %v532_v29, %v533_v32 }
 0x300   : > { %v551_v36 = vmax.f32 %v549_v30, %v550_v34  ;;  %v535_v37 = vrot.slane %v534_v35, 2 }
 0x302   : > { %v553_v38 = vsub.f32 %v502_v58, %v551_v36  ;;  %v555_v39 = vsub.f32 %v505_v60, %v551_v36  ;;  %v557_v40 = vsub.f32 %v508_v62, %v551_v36  ;;  %v559_v41 = vsub.f32 %v511_v0, %v551_v36 }
 0x303   : > { %v561_v50 = vsub.f32 %v514_v2, %v551_v36  ;;  %v536_v53 = vmax.f32 %v534_v35, %v535_v37  ;;  %v563_v54 = vsub.f32 %v517_v4, %v551_v36  ;;  %v565_v7 = vsub.f32 %v520_v6, %v551_v36 }
 0x304   : > { %v570_v51 = vmul.f32 1.442695, %v553_v38  ;;  %v574_v52 = vmul.f32 1.442695, %v555_v39  ;;  %v578_v55 = vmul.f32 1.442695, %v557_v40  ;;  %v567_v13 = vsub.f32 %v523_v12, %v551_v36 }
 0x305   : > { %v537_v56 = vrot.slane %v536_v53, 1  ;;  %v582_v57 = vmul.f32 1.442695, %v559_v41  ;;  %v586_v8 = vmul.f32 1.442695, %v561_v50 }
 0x306   : > { %993 = vpow2.f32 %v570_v51  ;;  %v590_v11 = vmul.f32 1.442695, %v563_v54  ;;  %v594_v4 = vmul.f32 1.442695, %v565_v7 }
 0x307   : > { %995 = vpow2.f32 %v574_v52  ;;  %v538_v10 = vmax.f32 %v536_v53, %v537_v56 }
 0x308   : > { %997 = vpow2.f32 %v578_v55  ;;  %v207_v55 = vld [vmem:[%s1263_s2 + $0xc] sm:$0xff]  }
 0x309   : > { %v552_v58 = vsub.f32 %v1155_v59, %v538_v10  ;;  %v554_v60 = vsub.f32 %v1157_v61, %v538_v10  ;;  %v556_v62 = vsub.f32 %v1159_v63, %v538_v10  ;;  %999 = vpow2.f32 %v582_v57 }
 0x30a   : > { %v558_v0 = vsub.f32 %v1161_v1, %v538_v10  ;;  %1001 = vpow2.f32 %v586_v8  ;;  %v560_v15 = vsub.f32 %v1163_v3, %v538_v10  ;;  %v598_v59 = vmul.f32 1.442695, %v567_v13 }
 0x30b   : > { %v568_v14 = vmul.f32 1.442695, %v552_v58  ;;  %1003 = vpow2.f32 %v590_v11  ;;  %v572_v12 = vmul.f32 1.442695, %v554_v60  ;;  %v576_v16 = vmul.f32 1.442695, %v556_v62 }
 0x30c   : > { %v1183_v2 = vpop.eup %993  ;;  %v562_v1 = vsub.f32 %v1165_v5, %v538_v10  ;;  %v580_v17 = vmul.f32 1.442695, %v558_v0  ;;  %v564_v3 = vsub.f32 %v1167_v9, %v538_v10  ;;  %v584_v20 = vmul.f32 1.442695, %v560_v15 }
 0x30d   : > { %v1185_v6 = vpop.eup %995  ;;  %1005 = vpow2.f32 %v568_v14  ;;  %v566_v28 = vsub.f32 %v1175_v22, %v538_v10  ;;  %v703_v57 = vunpack.c.l.bf16 %v207_v55  ;;  %v704_v14 = vunpack.c.h.bf16 %v207_v55 }
 0x30e   : > { %v613_v61 = vadd.f32 %v1185_v6, %v1183_v2  ;;  %v1190_v63 = vpop.eup %997  ;;  %1007 = vpow2.f32 %v572_v12  ;;  %v588_v5 = vmul.f32 1.442695, %v562_v1  ;;  %v592_v9 = vmul.f32 1.442695, %v564_v3 }
 0x30f   : > { %1009 = vpow2.f32 %v594_v4  ;;  %v1194_v19 = vpop.eup %999  ;;  %v596_v38 = vmul.f32 1.442695, %v566_v28  ;;  %705 = vxpose.xlu2.b32.start [1/2] (short) (narrow) %v703_v57, 32 }
 0x310   : > { %v614_v18 = vadd.f32 %v1190_v63, %v613_v61  ;;  %1011 = vpow2.f32 %v576_v16  ;;  %v1197_v23 = vpop.eup %1001  ;;  %v290_v61 = vpop.permute.xlu1 %289 }
 0x311   : > { %1013 = vpow2.f32 %v598_v59  ;;  %v1004_v25 = vpop.eup %1003  ;;  %v297_v3 = vmax.f32 %v1098_v33, %v290_v61 }
 0x312   : > { %v615_v24 = vadd.f32 %v1194_v19, %v614_v18  ;;  %1015 = vpow2.f32 %v580_v17 }
 0x313   : > { %v1201_v29 = vpop.eup %1005  ;;  %1017 = vpow2.f32 %v584_v20  ;;  %v300_v28 = vmax.f32 %v297_v3, %v1082_v21 }
 0x314   : > { %v616_v30 = vadd.f32 %v1197_v23, %v615_v24  ;;  %v1204_v32 = vpop.eup %1007  ;;  %1019 = vpow2.f32 %v588_v5 }
 0x315   : > { %v1010_v34 = vpop.eup %1009  ;;  %v600_v36 = vadd.f32 %v1204_v32, %v1201_v29  ;;  %1021 = vpow2.f32 %v592_v9 }
 0x316   : > { %v617_v35 = vadd.f32 %v1004_v25, %v616_v30  ;;  %v1208_v37 = vpop.eup %1011  ;;  %1023 = vpow2.f32 %v596_v38  ;;  %v308_v30 = vpop.permute.xlu2 %307 }
 0x317   : > { %v1014_v22 = vpop.eup %1013  ;;  %v601_v40 = vadd.f32 %v1208_v37, %v600_v36  ;;  %706 = vxpose.xlu2.b32.end [2/2] (short) (narrow) %v704_v14, 32  ;;  %v315_v36 = vmax.f32 %v300_v28, %v308_v30 }
 0x318   : > { %v618_v39 = vadd.f32 %v1010_v34, %v617_v35  ;;  %v1211_v41 = vpop.eup %1015 }
 0x319   : > { %v602_v51 = vadd.f32 %v1211_v41, %v601_v40  ;;  %v1018_v52 = vpop.eup %1017 }
 0x31a   : > { %v619_v50 = vadd.f32 %v1014_v22, %v618_v39  ;;  %v1020_v56 = vpop.eup %1019 }
 0x31b   : > { %v603_v54 = vadd.f32 %v1018_v52, %v602_v51  ;;  %v1022_v10 = vpop.eup %1021 }
 0x31c   : > { %v620_v53 = vrot.slane %v619_v50, 4  ;;  %v1024_v58 = vpop.eup %1023 }
 0x31d   : > { %v604_v8 = vadd.f32 %v1020_v56, %v603_v54 }
 0x31e   : > { %v621_v7 = vadd.f32 %v620_v53, %v619_v50  ;;  %v292_v40 = vpop.permute.xlu2 %291 }
 0x31f   : > { %v605_v13 = vadd.f32 %v1022_v10, %v604_v8 }
 0x320   : > { %v622_v11 = vrot.slane %v621_v7, 2 }
 0x321   : > { %v606_v62 = vadd.f32 %v1024_v58, %v605_v13 }
 0x322   : > { %v623_v60 = vadd.f32 %v622_v11, %v621_v7 }
 0x323   : > { %v607_v4 = vrot.slane %v606_v62, 4 }
 0x324   : > { %v624_v0 = vrot.slane %v623_v60, 1 }
 0x325   : > { %v608_v12 = vadd.f32 %v607_v4, %v606_v62 }
 0x326   : > { %v625_v15 = vadd.f32 %v624_v0, %v623_v60 }
 0x327   : > { %v609_v16 = vrot.slane %v608_v12, 2 }
 0x328   : > { %1025 = vrcp.f32 %v625_v15 }
 0x329   : > { %v610_v59 = vadd.f32 %v609_v16, %v608_v12 }
 0x32b   : > { %v611_v1 = vrot.slane %v610_v59, 1 }
 0x32d   : > { %v612_v18 = vadd.f32 %v611_v1, %v610_v59 }
 0x32e   : > { %v1026_v17 = vpop.eup %1025 }
 0x32f   : > { %v643_v20 = vmul.f32 %v1026_v17, %v1014_v22  ;;  %1027 = vrcp.f32 %v612_v18  ;;  %v641_v24 = vmul.f32 %v1026_v17, %v1010_v34  ;;  %v639_v5 = vmul.f32 %v1026_v17, %v1004_v25 }
 0x330   : > { %v637_v9 = vmul.f32 %v1026_v17, %v1197_v23  ;;  %v635_v39 = vmul.f32 %v1026_v17, %v1194_v19  ;;  %v633_v22 = vmul.f32 %v1026_v17, %v1190_v63  ;;  %v648_v34 = vrot.slane %v315_v36, 4 }
 0x331   : > { %688 = vmatpush.msra.mxu0 %v643_v20  ;;  %v631_v25 = vmul.f32 %v1026_v17, %v1185_v6  ;;  %v647_v23 = vrot.slane %v1085_v26, 4  ;;  %v629_v51 = vmul.f32 %v1026_v17, %v1183_v2  ;;  %v298_v19 = vmax.f32 %v1095_v31, %v292_v40  ;;  %v310_v2 = vpop.permute.xlu0 %309 }
 0x333   : > { %689 = vmatpush.msra.mxu0 %v641_v24  ;;  %v649_v53 = vsel %vm375_vm2, %v647_v23, %v648_v34  ;;  %v301_v26 = vmax.f32 %v298_v19, %v1088_v27 }
 0x335   : > { %690 = vmatpush.msra.mxu0 %v639_v5  ;;  %v1028_v35 = vpop.eup %1027  ;;  %v316_v54 = vmax.f32 %v301_v26, %v310_v2 }
 0x336   : > { %v642_v38 = vmul.f32 %v1028_v35, %v1024_v58  ;;  %v640_v33 = vmul.f32 %v1028_v35, %v1022_v10  ;;  %v638_v21 = vmul.f32 %v1028_v35, %v1020_v56  ;;  %v636_v50 = vmul.f32 %v1028_v35, %v1018_v52 }
 0x337   : > { %691 = vmatpush.msra.mxu0 %v637_v9  ;;  %v634_v63 = vmul.f32 %v1028_v35, %v1211_v41  ;;  %v632_v6 = vmul.f32 %v1028_v35, %v1208_v37  ;;  %v630_v52 = vmul.f32 %v1028_v35, %v1204_v32  ;;  %v628_v31 = vmul.f32 %v1028_v35, %v1201_v29 }
 0x338   : > { %665 = vmatpush.msrb.mxu1 %v642_v38  ;;  %v650_v41 = vrot.slane %v316_v54, 4 }
 0x339   : > { %692 = vmatpush.msra.mxu0 %v635_v39 }
 0x33a   : > { %666 = vmatpush.msrb.mxu1 %v640_v33  ;;  %v651_v37 = vsel %vm375_vm2, %v648_v34, %v650_v41 }
 0x33b   : > { %693 = vmatpush.msra.mxu0 %v633_v22 }
 0x33c   : > { %667 = vmatpush.msrb.mxu1 %v638_v21 }
 0x33d   : > { %694 = vmatpush.msra.mxu0 %v631_v25 }
 0x33e   : > { %668 = vmatpush.msrb.mxu1 %v636_v50 }
 0x33f   : > { %695 = vmatpush.msra.mxu0 %v629_v51 }
 0x340   : > { %953 = vmatmul.msk.f32.vlgmr.msra.gmra.mxu0 %vm652_vm4, %v649_v53  ;;  %669 = vmatpush.msrb.mxu1 %v634_v63 }
 0x342   : > { %670 = vmatpush.msrb.mxu1 %v632_v6 }
 0x344   : > { %671 = vmatpush.msrb.mxu1 %v630_v52 }
 0x346   : > { %672 = vmatpush.msrb.mxu1 %v628_v31 }
 0x347   : > { %951 = vmatmul.msk.f32.vlgmr.msrb.gmra.mxu1 %vm652_vm4, %v649_v53 }
 0x348   : > { %975 = vmatpush.msra.mxu1 %v643_v20 }
 0x34a   : > { %976 = vmatpush.msra.mxu1 %v641_v24 }
 0x34c   : > { %977 = vmatpush.msra.mxu1 %v639_v5 }
 0x34e   : > { %978 = vmatpush.msra.mxu1 %v637_v9 }
 0x34f   : > { %952 = vmatmul.msk.f32.gmra.mxu1 %vm652_vm4, %v651_v37 }
 0x350   : > { %979 = vmatpush.msra.mxu1 %v635_v39 }
 0x352   : > { %980 = vmatpush.msra.mxu1 %v633_v22 }
 0x354   : > { %981 = vmatpush.msra.mxu1 %v631_v25 }
 0x356   : > { %982 = vmatpush.msra.mxu1 %v629_v51 }
 0x357   : > { %954 = vmatmul.msk.f32.vlgmr.msra.gmra.mxu1 %vm652_vm4, %v651_v37 }
 0x3a8   : > { %v721_v29 = vpop.trf.xlu2 }
 0x3b0   : > { %v722_v55 = vpop.trf.xlu2 }
 0x3b8   : > { %v723_v7 = vpop.trf.xlu2 }
 0x3bd   : > { %v697_v57 = vpop.f32.mrf.mxu0 }
 0x3c0   : > { %v724_v8 = vpop.trf.xlu2 }
 0x3c4   : > { %v674_v27 = vpop.f32.mrf.mxu1 }
 0x3cc   : > { %v677_v32 = vpop.f32.mrf.mxu1 }
 0x3cd   : > { %764 = vmatpush.msrb.mxu2 %v677_v32 }
 0x3cf   : > { %765 = vmatpush.msrb.mxu2 %v674_v27 }
 0x3d0   : > { %955 = vmatmul.msk.f32.vlgmr.msrb.gmra.mxu2 %vm737_vm5, %v721_v29 }
 0x3d4   : > { %v700_v56 = vpop.f32.mrf.mxu1 }
 0x3d5   : > { %793 = vmatpush.msrb.mxu1 %v700_v56 }
 0x3d7   : > { %794 = vmatpush.msrb.mxu1 %v697_v57 }
 0x3d8   : > { %959 = vmatmul.msk.f32.vlgmr.msrb.gmra.mxu1 %vm737_vm5, %v721_v29  ;;  %956 = vmatmul.msk.f32.gmra.mxu2 %vm737_vm5, %v722_v55 }
 0x3e0   : > { %960 = vmatmul.msk.f32.gmra.mxu1 %vm737_vm5, %v722_v55  ;;  %957 = vmatmul.msk.f32.gmra.mxu2 %vm737_vm5, %v723_v7 }
 0x3e8   : > { %961 = vmatmul.msk.f32.gmra.mxu1 %vm737_vm5, %v723_v7  ;;  %958 = vmatmul.msk.f32.gmra.mxu2 %vm737_vm5, %v724_v8 }
 0x3f0   : > { %962 = vmatmul.msk.f32.gmra.mxu1 %vm737_vm5, %v724_v8 }
 0x453   : > { %v767_v10 = vpop.f32.mrf.mxu2 }
 0x454   : > { %v808_v11 = vadd.f32 %v767_v10, %v1133_v48 }
 0x455   : > { %v796_v13 = vpop.f32.mrf.mxu1 }
 0x456   : > { %v809_v58 = vadd.f32 %v796_v13, %v1135_v49  ;;  %816 = vst [vmem:[%s190_s6] sm:$0xff] %v808_v11 }
 0x458   : > { %817 = vst [vmem:[%s190_s6 + $0x8] sm:$0xff] %v809_v58 }
 0x45b   : > { %v770_v60 = vpop.f32.mrf.mxu2 }
 0x45c   : > { %v810_v62 = vadd.f32 %v770_v60, %v1125_v46 }
 0x45d   : > { %v799_v0 = vpop.f32.mrf.mxu1 }
 0x45e   : > { %v811_v4 = vadd.f32 %v799_v0, %v1127_v47  ;;  %818 = vst [vmem:[%s190_s6 + $0x10] sm:$0xff] %v810_v62 }
 0x460   : > { %819 = vst [vmem:[%s190_s6 + $0x18] sm:$0xff] %v811_v4 }
 0x463   : > { %v773_v14 = vpop.f32.mrf.mxu2 }
 0x464   : > { %v812_v15 = vadd.f32 %v773_v14, %v1119_v44 }
 0x465   : > { %v802_v12 = vpop.f32.mrf.mxu1 }
 0x466   : > { %v813_v16 = vadd.f32 %v802_v12, %v1123_v45  ;;  %820 = vst [vmem:[%s190_s6 + $0x20] sm:$0xff] %v812_v15 }
 0x468   : > { %821 = vst [vmem:[%s190_s6 + $0x28] sm:$0xff] %v813_v16 }
 0x46b   : > { %v776_v48 = vpop.f32.mrf.mxu2 }
 0x46c   : > { %v814_v49 = vadd.f32 %v776_v48, %v1115_v42 }
 0x46d   : > { %v805_v59 = vpop.f32.mrf.mxu1 }
 0x46e   : > { %v815_v61 = vadd.f32 %v805_v59, %v1117_v43  ;;  %822 = vst [vmem:[%s190_s6 + $0x30] sm:$0xff] %v814_v49 }
 0x470   : > { %823 = vst [vmem:[%s190_s6 + $0x38] sm:$0xff] %v815_v61 }
 0x471 PF: > { %s13_s12 = sadd.s32 1, %s1035_s12  }
 0x472   : > { %p10_p4 = scmp.ge.s32.totalorder %s13_s12, 4  }
 0x474   :  { %12 = sbr.rel (!%p10_p4) target bundleno = 1 (0x1), region = 65 }

</bundles_post_ra>
